<compile_context>
chip_gen: v7x
topology: tpu7x:2x2x1
jax: 0.10.0
libtpu: 0.0.40
codegen_flags: <defaults>
</compile_context>

<pallas_src>
import functools

import jax
import jax.numpy as jnp
from jax.experimental import pallas as pl
from jax.experimental.pallas import tpu as pltpu

LN_EPS = 1e-5  # nn.LayerNorm default


def _mlp_block_kernel(x_ref, g_ref, b_ref, w1_ref, b1_ref, w2_ref, b2_ref,
                      o_ref, xn_ref, acc_ref):
    # Grid: (row tiles [parallel], H tiles [arbitrary / reduction]).
    j = pl.program_id(1)

    @pl.when(j == 0)
    def _():
        # --- LayerNorm over full E (must stay untiled for correctness) ---
        x = x_ref[...].astype(jnp.float32)
        mean = jnp.mean(x, axis=-1, keepdims=True)
        centered = x - mean
        var = jnp.mean(centered * centered, axis=-1, keepdims=True)
        xn = centered * jax.lax.rsqrt(var + LN_EPS)
        xn = xn * g_ref[...] + b_ref[...]
        xn_ref[...] = xn.astype(xn_ref.dtype)          # bf16 for the MXU
        acc_ref[...] = jnp.zeros_like(acc_ref)

    # --- Linear(E -> th) on this H slice (bf16 x bf16 -> f32 accumulate) ---
    h = jnp.dot(xn_ref[...], w1_ref[...], preferred_element_type=jnp.float32)
    h = h + b1_ref[...]

    # --- GELU (exact, erf-based; matches nn.GELU() default), f32 ---
    h = 0.5 * h * (1.0 + jax.lax.erf(h * jnp.float32(0.70710678118654752440)))

    # (Dropout -> identity in eval mode)

    # --- Linear(th -> E) partial product, accumulated over H tiles ---
    acc_ref[...] += jnp.dot(h.astype(jnp.bfloat16), w2_ref[...],
                            preferred_element_type=jnp.float32)

    @pl.when(j == pl.num_programs(1) - 1)
    def _():
        # (Dropout -> identity in eval mode)
        o_ref[...] = (acc_ref[...] + b2_ref[...]).astype(o_ref.dtype)


def _round_up(a, b):
    return (a + b - 1) // b * b


def _pick_h_tile(H, desired, align=128):
    """Largest multiple of `align` <= desired that divides H (or full H)."""
    if H <= desired or H % align != 0:
        return H
    t = max(align, (desired // align) * align)
    while H % t != 0:
        t -= align
    return t


@functools.partial(jax.jit, static_argnames=("tm", "th"))
def mlp_block(x, gamma, beta, w1, b1, w2, b2, *, tm=256, th=512):
    """x: (B, S, E); weights in (in, out) convention; returns (B, S, E)."""
    B, S, E = x.shape
    H = w1.shape[1]
    N = B * S

    # Row tile: multiple of 8 sublanes; pad the row count so the grid divides evenly.
    tm = max(8, (tm // 8) * 8)
    tm_eff = min(tm, _round_up(N, 8))
    N_pad = _round_up(N, tm_eff)

    # Hidden tile: multiple of 128 lanes dividing H (or full H).
    th_eff = _pick_h_tile(H, th)

    x2d = x.reshape(N, E)
    if N_pad != N:
        x2d = jnp.pad(x2d, ((0, N_pad - N), (0, 0)))

    g2d = gamma.reshape(1, E).astype(jnp.float32)
    be2d = beta.reshape(1, E).astype(jnp.float32)
    b1_2d = b1.reshape(1, H).astype(jnp.float32)
    b2_2d = b2.reshape(1, E).astype(jnp.float32)
    # bf16 weights: half the HBM->VMEM traffic and native MXU dtype.
    w1_bf = w1.astype(jnp.bfloat16)
    w2_bf = w2.astype(jnp.bfloat16)

    grid = (N_pad // tm_eff, H // th_eff)

    out2d = pl.pallas_call(
        _mlp_block_kernel,
        out_shape=jax.ShapeDtypeStruct((N_pad, E), x.dtype),
        grid_spec=pltpu.PrefetchScalarGridSpec(
            num_scalar_prefetch=0,
            grid=grid,
            in_specs=[
                pl.BlockSpec((tm_eff, E), lambda i, j: (i, 0)),    # x row tile
                pl.BlockSpec((1, E), lambda i, j: (0, 0)),         # gamma
                pl.BlockSpec((1, E), lambda i, j: (0, 0)),         # beta
                pl.BlockSpec((E, th_eff), lambda i, j: (0, j)),    # W1 H-slice
                pl.BlockSpec((1, th_eff), lambda i, j: (0, j)),    # b1 H-slice
                pl.BlockSpec((th_eff, E), lambda i, j: (j, 0)),    # W2 H-slice
                pl.BlockSpec((1, E), lambda i, j: (0, 0)),         # b2
            ],
            out_specs=pl.BlockSpec((tm_eff, E), lambda i, j: (i, 0)),
            scratch_shapes=[
                pltpu.VMEM((tm_eff, E), jnp.bfloat16),  # normalized activations (reused over j)
                pltpu.VMEM((tm_eff, E), jnp.float32),   # f32 output accumulator
            ],
        ),
        compiler_params=pltpu.CompilerParams(
            dimension_semantics=("parallel", "arbitrary"),
            vmem_limit_bytes=48 * 1024 * 1024,
        ),
    )(x2d, g2d, be2d, w1_bf, b1_2d, w2_bf, b2_2d)

    if N_pad != N:
        out2d = out2d[:N]
    return out2d.reshape(B, S, E)


def _reference(x, gamma, beta, w1, b1, w2, b2):
    """Pure-JAX f32 reference of MLPBlock.forward (eval mode)."""
    mean = jnp.mean(x, axis=-1, keepdims=True)
    var = jnp.mean((x - mean) ** 2, axis=-1, keepdims=True)
    xn = (x - mean) / jnp.sqrt(var + LN_EPS) * gamma + beta
    h = xn @ w1 + b1
    h = jax.nn.gelu(h, approximate=False)
    return h @ w2 + b2


if __name__ == "__main__":
    # Small, lane-dense shapes: batch=2, seq=8, embeddingDim=128, hiddenLayer=256
    B, S, E, H = 2, 8, 128, 256

    key = jax.random.PRNGKey(0)
    kx, kw1, kb1, kw2, kb2 = jax.random.split(key, 5)

    x = jax.random.normal(kx, (B, S, E), dtype=jnp.float32)

    gamma = jnp.ones((E,), jnp.float32)
    beta = jnp.zeros((E,), jnp.float32)
    w1 = jax.random.normal(kw1, (E, H), dtype=jnp.float32) * 0.02
    b1 = jax.random.normal(kb1, (H,), dtype=jnp.float32) * 0.02
    w2 = jax.random.normal(kw2, (H, E), dtype=jnp.float32) * 0.02
    b2 = jax.random.normal(kb2, (E,), dtype=jnp.float32) * 0.02

    # th=128 exercises the H-reduction (accumulator) path: grid = (1, 2).
    out = mlp_block(x, gamma, beta, w1, b1, w2, b2, tm=256, th=128)
    out = jax.block_until_ready(out)

    ref = _reference(x, gamma, beta, w1, b1, w2, b2)
    assert out.shape == (B, S, E)
    # bf16 MXU operands -> relaxed tolerance vs the f32 reference.
    assert jnp.allclose(out, ref, atol=2e-2, rtol=2e-2), (
        f"max abs err {jnp.max(jnp.abs(out - ref))}"
    )
    print("KERNEL_OK")
</pallas_src>

<mosaic_0001>
module attributes {stable_mosaic.version = 11 : i64} {
  func.func @_mlp_block_kernel(%arg0: i32, %arg1: i32, %arg2: memref<16x128xf32, #tpu.memory_space<vmem>>, %arg3: memref<1x128xf32, #tpu.memory_space<vmem>>, %arg4: memref<1x128xf32, #tpu.memory_space<vmem>>, %arg5: memref<128x128xbf16, #tpu.memory_space<vmem>>, %arg6: memref<1x128xf32, #tpu.memory_space<vmem>>, %arg7: memref<128x128xbf16, #tpu.memory_space<vmem>>, %arg8: memref<1x128xf32, #tpu.memory_space<vmem>>, %arg9: memref<16x128xf32, #tpu.memory_space<vmem>>, %arg10: memref<16x128xbf16, #tpu.memory_space<vmem>>, %arg11: memref<16x128xf32, #tpu.memory_space<vmem>>) attributes {dimension_semantics = [#tpu.dimension_semantics<parallel>, #tpu.dimension_semantics<arbitrary>], iteration_bounds = array<i64: 1, 2>, scalar_prefetch = 0 : i64, scratch_operands = 2 : i64, tpu.core_type = #tpu.core_type<tc>, window_params = [{transform_indices = @transform_0, window_bounds = array<i64: 16, 128>}, {pipeline_mode = #tpu.pipeline_mode<synchronous>, transform_indices = @transform_1, window_bounds = array<i64: 1, 128>}, {pipeline_mode = #tpu.pipeline_mode<synchronous>, transform_indices = @transform_2, window_bounds = array<i64: 1, 128>}, {transform_indices = @transform_3, window_bounds = array<i64: 128, 128>}, {transform_indices = @transform_4, window_bounds = array<i64: 1, 128>}, {transform_indices = @transform_5, window_bounds = array<i64: 128, 128>}, {pipeline_mode = #tpu.pipeline_mode<synchronous>, transform_indices = @transform_6, window_bounds = array<i64: 1, 128>}, {transform_indices = @transform_7, window_bounds = array<i64: 16, 128>}]} {
    %c0_i32 = arith.constant 0 : i32
    %0 = arith.cmpi eq, %arg1, %c0_i32 : i32
    %1 = arith.extui %0 : i1 to i32
    %c0_i32_0 = arith.constant 0 : i32
    %2 = arith.cmpi ne, %1, %c0_i32_0 : i32
    scf.if %2 {
      %c0_17 = arith.constant 0 : index
      %c0_18 = arith.constant 0 : index
      %26 = vector.load %arg2[%c0_17, %c0_18] : memref<16x128xf32, #tpu.memory_space<vmem>>, vector<16x128xf32>
      %cst_19 = arith.constant dense<0.000000e+00> : vector<16xf32>
      %27 = vector.multi_reduction <add>, %26, %cst_19 [1] : vector<16x128xf32> to vector<16xf32>
      %28 = vector.shape_cast %27 : vector<16xf32> to vector<16x1xf32>
      %cst_20 = arith.constant 1.280000e+02 : f32
      %29 = vector.broadcast %cst_20 : f32 to vector<16x1xf32>
      %30 = arith.divf %28, %29 : vector<16x1xf32>
      %31 = vector.broadcast %30 : vector<16x1xf32> to vector<16x128xf32>
      %32 = arith.subf %26, %31 : vector<16x128xf32>
      %33 = arith.mulf %32, %32 : vector<16x128xf32>
      %cst_21 = arith.constant dense<0.000000e+00> : vector<16xf32>
      %34 = vector.multi_reduction <add>, %33, %cst_21 [1] : vector<16x128xf32> to vector<16xf32>
      %35 = vector.shape_cast %34 : vector<16xf32> to vector<16x1xf32>
      %cst_22 = arith.constant 1.280000e+02 : f32
      %36 = vector.broadcast %cst_22 : f32 to vector<16x1xf32>
      %37 = arith.divf %35, %36 : vector<16x1xf32>
      %cst_23 = arith.constant 9.99999974E-6 : f32
      %38 = vector.broadcast %cst_23 : f32 to vector<16x1xf32>
      %39 = arith.addf %37, %38 : vector<16x1xf32>
      %40 = math.rsqrt %39 : vector<16x1xf32>
      %41 = vector.broadcast %40 : vector<16x1xf32> to vector<16x128xf32>
      %42 = arith.mulf %32, %41 : vector<16x128xf32>
      %c0_24 = arith.constant 0 : index
      %c0_25 = arith.constant 0 : index
      %43 = vector.load %arg3[%c0_24, %c0_25] : memref<1x128xf32, #tpu.memory_space<vmem>>, vector<1x128xf32>
      %44 = vector.broadcast %43 : vector<1x128xf32> to vector<16x128xf32>
      %45 = arith.mulf %42, %44 : vector<16x128xf32>
      %c0_26 = arith.constant 0 : index
      %c0_27 = arith.constant 0 : index
      %46 = vector.load %arg4[%c0_26, %c0_27] : memref<1x128xf32, #tpu.memory_space<vmem>>, vector<1x128xf32>
      %47 = vector.broadcast %46 : vector<1x128xf32> to vector<16x128xf32>
      %48 = arith.addf %45, %47 : vector<16x128xf32>
      %49 = arith.truncf %48 : vector<16x128xf32> to vector<16x128xbf16>
      %c0_28 = arith.constant 0 : index
      %c0_29 = arith.constant 0 : index
      %50 = vector.load %arg10[%c0_28, %c0_29] : memref<16x128xbf16, #tpu.memory_space<vmem>>, vector<16x128xbf16>
      tpu.vector_store %arg10[%c0_28, %c0_29], %49 {strides = array<i32>} : memref<16x128xbf16, #tpu.memory_space<vmem>>, vector<16x128xbf16>,
      %cst_30 = arith.constant 0.000000e+00 : f32
      %51 = vector.broadcast %cst_30 : f32 to vector<16x128xf32>
      %c0_31 = arith.constant 0 : index
      %c0_32 = arith.constant 0 : index
      %52 = vector.load %arg11[%c0_31, %c0_32] : memref<16x128xf32, #tpu.memory_space<vmem>>, vector<16x128xf32>
      tpu.vector_store %arg11[%c0_31, %c0_32], %51 {strides = array<i32>} : memref<16x128xf32, #tpu.memory_space<vmem>>, vector<16x128xf32>,
    } else {
    }
    %c0 = arith.constant 0 : index
    %c0_1 = arith.constant 0 : index
    %3 = vector.load %arg10[%c0, %c0_1] : memref<16x128xbf16, #tpu.memory_space<vmem>>, vector<16x128xbf16>
    %c0_2 = arith.constant 0 : index
    %c0_3 = arith.constant 0 : index
    %4 = vector.load %arg5[%c0_2, %c0_3] : memref<128x128xbf16, #tpu.memory_space<vmem>>, vector<128x128xbf16>
    %cst = arith.constant dense<0.000000e+00> : vector<16x128xf32>
    %5 = tpu.matmul %3, %4, %cst {dimension_numbers = #tpu.dot_dimension_numbers<[1], [0], [0], [1], [0, 0, 1, 1], [], []>} : vector<16x128xbf16>, vector<128x128xbf16>, vector<16x128xf32> -> vector<16x128xf32>
    %c0_4 = arith.constant 0 : index
    %c0_5 = arith.constant 0 : index
    %6 = vector.load %arg6[%c0_4, %c0_5] : memref<1x128xf32, #tpu.memory_space<vmem>>, vector<1x128xf32>
    %7 = vector.broadcast %6 : vector<1x128xf32> to vector<16x128xf32>
    %8 = arith.addf %5, %7 : vector<16x128xf32>
    %cst_6 = arith.constant 5.000000e-01 : f32
    %9 = vector.broadcast %cst_6 : f32 to vector<16x128xf32>
    %10 = arith.mulf %9, %8 : vector<16x128xf32>
    %cst_7 = arith.constant 0.707106769 : f32
    %11 = vector.broadcast %cst_7 : f32 to vector<16x128xf32>
    %12 = arith.mulf %8, %11 : vector<16x128xf32>
    %13 = math.erf %12 : vector<16x128xf32>
    %cst_8 = arith.constant 1.000000e+00 : f32
    %14 = vector.broadcast %cst_8 : f32 to vector<16x128xf32>
    %15 = arith.addf %14, %13 : vector<16x128xf32>
    %16 = arith.mulf %10, %15 : vector<16x128xf32>
    %c0_9 = arith.constant 0 : index
    %c0_10 = arith.constant 0 : index
    %17 = vector.load %arg11[%c0_9, %c0_10] : memref<16x128xf32, #tpu.memory_space<vmem>>, vector<16x128xf32>
    %18 = arith.truncf %16 : vector<16x128xf32> to vector<16x128xbf16>
    %c0_11 = arith.constant 0 : index
    %c0_12 = arith.constant 0 : index
    %19 = vector.load %arg7[%c0_11, %c0_12] : memref<128x128xbf16, #tpu.memory_space<vmem>>, vector<128x128xbf16>
    %cst_13 = arith.constant dense<0.000000e+00> : vector<16x128xf32>
    %20 = tpu.matmul %18, %19, %cst_13 {dimension_numbers = #tpu.dot_dimension_numbers<[1], [0], [0], [1], [0, 0, 1, 1], [], []>} : vector<16x128xbf16>, vector<128x128xbf16>, vector<16x128xf32> -> vector<16x128xf32>
    %21 = arith.addf %17, %20 : vector<16x128xf32>
    %c0_14 = arith.constant 0 : index
    %c0_15 = arith.constant 0 : index
    %22 = vector.load %arg11[%c0_14, %c0_15] : memref<16x128xf32, #tpu.memory_space<vmem>>, vector<16x128xf32>
    tpu.vector_store %arg11[%c0_14, %c0_15], %21 {strides = array<i32>} : memref<16x128xf32, #tpu.memory_space<vmem>>, vector<16x128xf32>,
    %c1_i32 = arith.constant 1 : i32
    %23 = arith.cmpi eq, %arg1, %c1_i32 : i32
    %24 = arith.extui %23 : i1 to i32
    %c0_i32_16 = arith.constant 0 : i32
    %25 = arith.cmpi ne, %24, %c0_i32_16 : i32
    scf.if %25 {
      %c0_17 = arith.constant 0 : index
      %c0_18 = arith.constant 0 : index
      %26 = vector.load %arg11[%c0_17, %c0_18] : memref<16x128xf32, #tpu.memory_space<vmem>>, vector<16x128xf32>
      %c0_19 = arith.constant 0 : index
      %c0_20 = arith.constant 0 : index
      %27 = vector.load %arg8[%c0_19, %c0_20] : memref<1x128xf32, #tpu.memory_space<vmem>>, vector<1x128xf32>
      %28 = vector.broadcast %27 : vector<1x128xf32> to vector<16x128xf32>
      %29 = arith.addf %26, %28 : vector<16x128xf32>
      %c0_21 = arith.constant 0 : index
      %c0_22 = arith.constant 0 : index
      %30 = vector.load %arg9[%c0_21, %c0_22] : memref<16x128xf32, #tpu.memory_space<vmem>>, vector<16x128xf32>
      tpu.vector_store %arg9[%c0_21, %c0_22], %29 {strides = array<i32>} : memref<16x128xf32, #tpu.memory_space<vmem>>, vector<16x128xf32>,
    } else {
    }
    return
  }
  func.func @transform_0(%arg0: i32, %arg1: i32) -> (i32, i32) {
    %c0_i32 = arith.constant 0 : i32
    %c0_i32_0 = arith.constant 0 : i32
    return %arg0, %c0_i32 : i32, i32
  }
  func.func @transform_1(%arg0: i32, %arg1: i32) -> (i32, i32) {
    %c0_i32 = arith.constant 0 : i32
    %c0_i32_0 = arith.constant 0 : i32
    %c0_i32_1 = arith.constant 0 : i32
    return %c0_i32, %c0_i32_0 : i32, i32
  }
  func.func @transform_2(%arg0: i32, %arg1: i32) -> (i32, i32) {
    %c0_i32 = arith.constant 0 : i32
    %c0_i32_0 = arith.constant 0 : i32
    %c0_i32_1 = arith.constant 0 : i32
    return %c0_i32, %c0_i32_0 : i32, i32
  }
  func.func @transform_3(%arg0: i32, %arg1: i32) -> (i32, i32) {
    %c0_i32 = arith.constant 0 : i32
    %c0_i32_0 = arith.constant 0 : i32
    return %c0_i32, %arg1 : i32, i32
  }
  func.func @transform_4(%arg0: i32, %arg1: i32) -> (i32, i32) {
    %c0_i32 = arith.constant 0 : i32
    %c0_i32_0 = arith.constant 0 : i32
    return %c0_i32, %arg1 : i32, i32
  }
  func.func @transform_5(%arg0: i32, %arg1: i32) -> (i32, i32) {
    %c0_i32 = arith.constant 0 : i32
    %c0_i32_0 = arith.constant 0 : i32
    return %arg1, %c0_i32 : i32, i32
  }
  func.func @transform_6(%arg0: i32, %arg1: i32) -> (i32, i32) {
    %c0_i32 = arith.constant 0 : i32
    %c0_i32_0 = arith.constant 0 : i32
    %c0_i32_1 = arith.constant 0 : i32
    return %c0_i32, %c0_i32_0 : i32, i32
  }
  func.func @transform_7(%arg0: i32, %arg1: i32) -> (i32, i32) {
    %c0_i32 = arith.constant 0 : i32
    %c0_i32_0 = arith.constant 0 : i32
    return %arg0, %c0_i32 : i32, i32
  }
}

</mosaic_0001>

<bundles_post_ra>
// kernel: mlp_block.1
= control target key start
LH: loop header
LB: loop body
LE: loop exit
PB: predicated region body
PF: predicated region fallthrough
CT: control target
= control target key end

     0   :  { %12 = vsyncpa [#allocation6], 0  ;;  %s1136_s24 = smov 0   ;;  %s1138_s25 = smov 0   ;;  %s1298_s0 = inlined_call_operand.vmem [shape: f32[16,128], index: 0, kind: input, shape index: {}]   ;;  %s1299_s1 = inlined_call_operand.vmem [shape: f32[1,128], index: 1, kind: input, shape index: {}]   ;;  %s1300_s2 = inlined_call_operand.vmem [shape: f32[1,128], index: 2, kind: input, shape index: {}]   ;;  %s1301_s3 = inlined_call_operand.vmem [shape: bf16[128,256], index: 3, kind: input, shape index: {}]   ;;  %s1302_s4 = inlined_call_operand.vmem [shape: f32[1,256], index: 4, kind: input, shape index: {}]   ;;  %s1303_s5 = inlined_call_operand.vmem [shape: bf16[256,128], index: 5, kind: input, shape index: {}]   ;;  %s1304_s6 = inlined_call_operand.vmem [shape: f32[1,128], index: 6, kind: input, shape index: {}]   ;;  %s1305_s7 = inlined_call_operand.hbm [shape: f32[16,128], index: 7, kind: output, shape index: {}]  }
   0x1   :  { %s1140_s26 = smov 0   ;;  %s1142_s27 = smov 0  }
   0x2   :  { %s1144_s28 = smov 0  }
   0x3 LB: > { %s850_s29 = sadd.s32 4294967295, %s1088_s28   ;;  %s27_s30 = sadd.s32 1, %s1084_s27  ;;  %s1088_s28 = sphi %s1144_s28, %s18_s28   ;;  %s1084_s27 = sphi %s1142_s27, %s1310_s27   ;;  %s1080_s26 = sphi %s1140_s26, %s1309_s26   ;;  %s1076_s25 = sphi %s1138_s25, %s1308_s25   ;;  %s1072_s24 = sphi %s1136_s24, %s1307_s24  }
   0x4   : > { %p28_p0 = scmp.ge.s32.totalorder %s27_s30, 2  ;;  %p112_p1 = scmp.ne.s32.totalorder %s1076_s25, %s1072_s24 }
   0x5   : > { %p113_p2 = scmp.eq.s32.totalorder %s1088_s28, 0  ;;  %s105_s9 = sadd.s32 1, %s1076_s25 }
   0x6   : > { %s1312_s30 = smov (%p28_p0, %s27_s30), 0  ;;  %p853_p5 = scmp.ge.s32.totalorder %s1088_s28, 2 }
   0x7   : > { %p114_p3 = por %p113_p2, %p112_p1  ;;  %s102_s8 = ssub.s32 %s1084_s27, %s1312_s30 }
   0x8   : > { %p103_p4 = scmp.eq.s32.totalorder %s102_s8, 0  ;;  %255 = sbr.rel (%p853_p5) target bundleno = 29 (0x1d), region = 32 }
   0xa   : > { %s1172_s10 = scalar_select %p103_p4, %s1076_s25, %s105_s9  }
   0xf   : > { %258 = sbr.rel (!%p114_p3) target bundleno = 29 (0x1d), region = 36  ;;  %s260_s11 = sand.u32 (%p114_p3), 1, %s1076_s25  }
  0x10   : > { %s855_s12 = sshll.u32 (%p114_p3), %s1084_s27, 2  ;;  %s854_s13 = sshll.u32 (%p114_p3), %s260_s11, 6 }
  0x11   : > { %s1180_s16 = scalar_lea.vmem (%p114_p3), %s1301_s3, %s855_s12  ;;  %s262_s17 = scalar_lea.vmem (%p114_p3), [#allocation4], %s854_s13 }
  0x12   : > { %v280_v0 = vld [vmem:[%s1180_s16] sm:$0xf] (%p114_p3)  ;;  %v282_v1 = vld [vmem:[%s1180_s16 + $0x8] sm:$0xf] (%p114_p3)  ;;  %v284_v2 = vld [vmem:[%s1180_s16 + $0x10] sm:$0xf] (%p114_p3) }
  0x13   : > { %281 = vst [vmem:[%s262_s17] sm:$0xf] (%p114_p3), %v280_v0  ;;  %283 = vst [vmem:[%s262_s17 + $0x4] sm:$0xf] (%p114_p3), %v282_v1  ;;  %v286_v3 = vld [vmem:[%s1180_s16 + $0x18] sm:$0xf] (%p114_p3) }
  0x14   : > { %v288_v4 = vld [vmem:[%s1180_s16 + $0x20] sm:$0xf] (%p114_p3)  ;;  %285 = vst [vmem:[%s262_s17 + $0x8] sm:$0xf] (%p114_p3), %v284_v2  ;;  %287 = vst [vmem:[%s262_s17 + $0xc] sm:$0xf] (%p114_p3), %v286_v3 }
  0x15   : > { %289 = vst [vmem:[%s262_s17 + $0x10] sm:$0xf] (%p114_p3), %v288_v4  ;;  %v290_v5 = vld [vmem:[%s1180_s16 + $0x28] sm:$0xf] (%p114_p3)  ;;  %v292_v6 = vld [vmem:[%s1180_s16 + $0x30] sm:$0xf] (%p114_p3) }
  0x16   : > { %v294_v7 = vld [vmem:[%s1180_s16 + $0x38] sm:$0xf]  ;;  %291 = vst [vmem:[%s262_s17 + $0x14] sm:$0xf] %v290_v5  ;;  %293 = vst [vmem:[%s262_s17 + $0x18] sm:$0xf] %v292_v6 }
  0x17   : > { %295 = vst [vmem:[%s262_s17 + $0x1c] sm:$0xf] %v294_v7  ;;  %v296_v8 = vld [vmem:[%s1180_s16 + $0x40] sm:$0xf]  ;;  %v298_v9 = vld [vmem:[%s1180_s16 + $0x48] sm:$0xf] }
  0x18   : > { %v300_v10 = vld [vmem:[%s1180_s16 + $0x50] sm:$0xf]  ;;  %297 = vst [vmem:[%s262_s17 + $0x20] sm:$0xf] %v296_v8  ;;  %299 = vst [vmem:[%s262_s17 + $0x24] sm:$0xf] %v298_v9 }
  0x19   : > { %301 = vst [vmem:[%s262_s17 + $0x28] sm:$0xf] %v300_v10  ;;  %v302_v11 = vld [vmem:[%s1180_s16 + $0x58] sm:$0xf]  ;;  %v304_v12 = vld [vmem:[%s1180_s16 + $0x60] sm:$0xf] }
  0x1a   : > { %v306_v13 = vld [vmem:[%s1180_s16 + $0x68] sm:$0xf]  ;;  %303 = vst [vmem:[%s262_s17 + $0x2c] sm:$0xf] %v302_v11  ;;  %305 = vst [vmem:[%s262_s17 + $0x30] sm:$0xf] %v304_v12 }
  0x1b   : > { %307 = vst [vmem:[%s262_s17 + $0x34] sm:$0xf] %v306_v13  ;;  %v308_v14 = vld [vmem:[%s1180_s16 + $0x70] sm:$0xf]  ;;  %v310_v15 = vld [vmem:[%s1180_s16 + $0x78] sm:$0xf] }
  0x1c   : > { %309 = vst [vmem:[%s262_s17 + $0x38] sm:$0xf] %v308_v14  ;;  %311 = vst [vmem:[%s262_s17 + $0x3c] sm:$0xf] %v310_v15 }
  0x1d PF: > { %p856_p6 = scmp.ge.s32.totalorder %s1088_s28, 1  ;;  %p380_p7 = scmp.lt.s32.totalorder %s1088_s28, 3 }
  0x1f   : > { %p381_p8 = pnand %p856_p6, %p380_p7 }
  0x20   : > { %s387_s18 = sand.u32 (!%p381_p8), 1, %s1072_s24   ;;  %p432_p9 = scmp.lt.s32.totalorder (!%p381_p8), %s1080_s26, 1 }
  0x21   : > { %384 = sbr.rel (%p381_p8) target bundleno = 882 (0x372), region = 85  ;;  %s857_s19 = sshll.u32 (!%p381_p8), %s387_s18, 6 }
  0x22   : > { %s858_s20 = sshll.u32 (!%p381_p8), %s1080_s26, 4  ;;  %s1215_s14 = scalar_lea.vmem (!%p381_p8), [#allocation4], %s857_s19 }
  0x23   : > { %p436_p10 = scmp.lt.s32.totalorder (!%p381_p8), %s858_s20, 31  ;;  %p860_p11 = scmp.ne.s32.totalorder (!%p381_p8), %s1080_s26, 0 }
  0x28   : > { %s1204_s21 = scalar_select %p432_p9, %s1080_s26, 1 }
  0x29   : > { %s1314_s20 = smov (!%p436_p10, %s858_s20), 31  ;;  %446 = sbr.rel (%p860_p11) target bundleno = 361 (0x169), region = 93 }
  0x2a   : > { %s434_s8 = scalar_lea.vmem %s1302_s4, %s1204_s21  ;;  %s859_s9 = sshll.u32 %s1314_s20, 2  ;;  %v447_v16 = vld [vmem:[%s1298_s0] sm:$0xff] (!%p860_p11)  ;;  %v448_v17 = vld [vmem:[%s1298_s0 + $0x8] sm:$0xff] (!%p860_p11)  ;;  %v1090_v26 = vmov (!%p860_p11), 0.0  }
  0x2b   : > { %s1213_s13 = scalar_lea.vmem %s1303_s5, %s859_s9  ;;  %449 = vadd.xlane.f32.xlu0 (!%p860_p11), %v447_v16  ;;  %492 = vst [vmem:[#allocation3] sm:$0xff] (!%p860_p11), %v1090_v26  ;;  %493 = vst [vmem:[#allocation3 + $0x8] sm:$0xff] (!%p860_p11), %v1090_v26  ;;  %v861_v35 = vld [vmem:[%s1299_s1] ss:$0 sm:$0xff] (!%p860_p11) }
  0x2c   : > { %v862_v39 = vld [vmem:[%s1300_s2] ss:$0 sm:$0xff] (!%p860_p11) }
  0x2f   : > { %451 = vadd.xlane.f32.xlu0 (!%p860_p11), %v448_v17 }
  0xb8   : > { %v450_v18 = vpop.xlane.xlu0 %449 }
  0xb9   : > { %v454_v19 = vmul.f32 0.0078125, %v450_v18 }
  0xbb   : > { %v456_v20 = vsub.f32 %v447_v16, %v454_v19 }
  0xbc   : > { %v452_v21 = vpop.xlane.xlu0 %451 }
  0xbd   : > { %v455_v22 = vmul.f32 0.0078125, %v452_v21  ;;  %v458_v23 = vmul.f32 %v456_v20, %v456_v20 }
  0xbf   : > { %v457_v24 = vsub.f32 %v448_v17, %v455_v22  ;;  %460 = vadd.xlane.f32.xlu1 %v458_v23 }
  0xc1   : > { %v459_v25 = vmul.f32 %v457_v24, %v457_v24 }
  0xc3   : > { %462 = vadd.xlane.f32.xlu1 %v459_v25 }
 0x14c   : > { %v461_v27 = vpop.xlane.xlu1 %460 }
 0x14d   : > { %v464_v28 = vmul.f32 0.0078125, %v461_v27 }
 0x14f   : > { %v466_v29 = vadd.f32 1e-05, %v464_v28 }
 0x150   : > { %v463_v30 = vpop.xlane.xlu1 %462 }
 0x151   : > { %996 = vrsqrt.f32 %v466_v29  ;;  %v465_v31 = vmul.f32 0.0078125, %v463_v30 }
 0x153   : > { %v467_v32 = vadd.f32 1e-05, %v465_v31 }
 0x155   : > { %998 = vrsqrt.f32 %v467_v32 }
 0x15b   : > { %v997_v33 = vpop.eup %996 }
 0x15c   : > { %v470_v34 = vmul.f32 %v997_v33, %v456_v20 }
 0x15e   : > { %v479_v37 = vmul.f32 %v861_v35, %v470_v34 }
 0x15f   : > { %v999_v36 = vpop.eup %998 }
 0x160   : > { %v471_v38 = vmul.f32 %v999_v36, %v457_v24  ;;  %v488_v41 = vadd.f32 %v862_v39, %v479_v37 }
 0x162   : > { %v480_v40 = vmul.f32 %v861_v35, %v471_v38 }
 0x164   : > { %v489_v42 = vadd.f32 %v862_v39, %v480_v40 }
 0x166   : > { %v490_v43 = vpack.c.bf16 %v489_v42, %v488_v41 }
 0x168   : > { %491 = vst [vmem:[#allocation2] sm:$0xff] %v490_v43 }
 0x169 PF: > { %v1000_v44 = vld [vmem:[%s1215_s14] sm:$0xff]   ;;  %v1091_v45 = vmov 0.0   ;;  %v1001_v46 = vld [vmem:[%s1215_s14 + $0x8] sm:$0xff]   ;;  %vm1092_vm0 = vmmov 0   ;;  %v1002_v47 = vld [vmem:[%s1215_s14 + $0x10] sm:$0xff]   ;;  %p880_p12 = scmp.ne.s32.totalorder %s1080_s26, 1 }
 0x16a   : > { %904 = vmatprep.subr.bf16.mxu0 %v1091_v45  ;;  %924 = vmatprep.subr.bf16.mxu1 %v1091_v45  ;;  %v1008_v48 = vld [vmem:[%s1213_s13] sm:$0xff]   ;;  %v1003_v49 = vld [vmem:[%s1215_s14 + $0x18] sm:$0xff]   ;;  %v1009_v50 = vld [vmem:[%s1213_s13 + $0x8] sm:$0xff]  }
 0x16b   : > { %905 = vmatpush3.bf16.msra.mxu0 %v1000_v44  ;;  %920 = vmatprep.mubr.msk.bf16.mxu0 %vm1092_vm0, %v1091_v45  ;;  %v1004_v51 = vld [vmem:[%s1215_s14 + $0x20] sm:$0xff]   ;;  %v1005_v52 = vld [vmem:[%s1215_s14 + $0x28] sm:$0xff]   ;;  %v1006_v53 = vld [vmem:[%s1215_s14 + $0x30] sm:$0xff]  }
 0x16c   : > { %906 = vmatprep.subr.bf16.mxu0 %v1091_v45  ;;  %940 = vmatprep.mubr.msk.bf16.mxu1 %vm1092_vm0, %v1091_v45  ;;  %v1007_v54 = vld [vmem:[%s1215_s14 + $0x38] sm:$0xff]   ;;  %v1011_v57 = vld [vmem:[%s1213_s13 + $0x18] sm:$0xff]   ;;  %v1012_v58 = vld [vmem:[%s1213_s13 + $0x20] sm:$0xff]  }
 0x16d   : > { %925 = vmatpush3.bf16.msra.mxu1 %v1008_v48  ;;  %v1010_v56 = vld [vmem:[%s1213_s13 + $0x10] sm:$0xff]   ;;  %v1013_v59 = vld [vmem:[%s1213_s13 + $0x28] sm:$0xff]   ;;  %v1015_v61 = vld [vmem:[%s1213_s13 + $0x38] sm:$0xff]  }
 0x16e   : > { %926 = vmatprep.subr.bf16.mxu1 %v1091_v45  ;;  %v1014_v60 = vld [vmem:[%s1213_s13 + $0x30] sm:$0xff]   ;;  %v863_v62 = vld [vmem:[%s434_s8] ss:$0 sm:$0xff]  ;;  %v617_v16 = vld [vmem:[#allocation3] sm:$0xff] }
 0x16f   : > { %907 = vmatpush3.bf16.msra.mxu0 %v1001_v46  ;;  %v494_v55 = vld [vmem:[#allocation2] sm:$0xff]  ;;  %v618_v18 = vld [vmem:[#allocation3 + $0x8] sm:$0xff] }
 0x170   : > { %908 = vmatprep.subr.bf16.mxu0 %v1091_v45  ;;  %v881_v25 = vld [vmem:[%s1304_s6] ss:$0 sm:$0xff] (!%p880_p12) }
 0x171   : > { %927 = vmatpush3.bf16.msra.mxu1 %v1009_v50 }
 0x172   : > { %928 = vmatprep.subr.bf16.mxu1 %v1091_v45 }
 0x173   : > { %909 = vmatpush3.bf16.msra.mxu0 %v1002_v47 }
 0x174   : > { %910 = vmatprep.subr.bf16.mxu0 %v1091_v45 }
 0x175   : > { %929 = vmatpush3.bf16.msra.mxu1 %v1010_v56 }
 0x176   : > { %930 = vmatprep.subr.bf16.mxu1 %v1091_v45 }
 0x177   : > { %911 = vmatpush3.bf16.msra.mxu0 %v1003_v49 }
 0x178   : > { %912 = vmatprep.subr.bf16.mxu0 %v1091_v45 }
 0x179   : > { %931 = vmatpush3.bf16.msra.mxu1 %v1011_v57 }
 0x17a   : > { %932 = vmatprep.subr.bf16.mxu1 %v1091_v45 }
 0x17b   : > { %913 = vmatpush3.bf16.msra.mxu0 %v1004_v51 }
 0x17c   : > { %914 = vmatprep.subr.bf16.mxu0 %v1091_v45 }
 0x17d   : > { %933 = vmatpush3.bf16.msra.mxu1 %v1012_v58 }
 0x17e   : > { %934 = vmatprep.subr.bf16.mxu1 %v1091_v45 }
 0x17f   : > { %915 = vmatpush3.bf16.msra.mxu0 %v1005_v52 }
 0x180   : > { %916 = vmatprep.subr.bf16.mxu0 %v1091_v45 }
 0x181   : > { %935 = vmatpush3.bf16.msra.mxu1 %v1013_v59 }
 0x182   : > { %936 = vmatprep.subr.bf16.mxu1 %v1091_v45 }
 0x183   : > { %917 = vmatpush3.bf16.msra.mxu0 %v1006_v53 }
 0x184   : > { %918 = vmatprep.subr.bf16.mxu0 %v1091_v45 }
 0x185   : > { %937 = vmatpush3.bf16.msra.mxu1 %v1014_v60 }
 0x186   : > { %938 = vmatprep.subr.bf16.mxu1 %v1091_v45 }
 0x187   : > { %919 = vmatpush3.bf16.msra.mxu0 %v1007_v54 }
 0x189   : > { %939 = vmatpush3.bf16.msra.mxu1 %v1015_v61 }
 0x18a   : > { %921 = vmatmul.mubr.bf16.vlgmr.msra.gmra.mrb[0].mxu0 %v494_v55 }
 0x25d   : > { %v600_v63 = vpop.f32.mrb[0].mxu0 }
 0x25e   : > { %v601_v0 = vadd.f32 %v863_v62, %v600_v63  ;;  %v922_v1 = vpop.f32.mrb[1].mxu0 }
 0x25f   : > { %v603_v2 = vpop.f32.mrb[2].mxu0 }
 0x260   : > { %v609_v3 = vmul.f32 0.70710677, %v601_v0  ;;  %v604_v4 = vadd.f32 %v863_v62, %v603_v2  ;;  %v923_v5 = vpop.f32.mrb[3].mxu0  ;;  %v607_v10 = vmul.f32 0.5, %v601_v0 }
 0x262   : > { %1016 = verf.f32 %v609_v3  ;;  %v610_v6 = vmul.f32 0.70710677, %v604_v4  ;;  %v608_v11 = vmul.f32 0.5, %v604_v4 }
 0x264   : > { %1018 = verf.f32 %v610_v6 }
 0x26c   : > { %v1017_v7 = vpop.eup %1016 }
 0x26d   : > { %v613_v8 = vadd.f32 1.0, %v1017_v7 }
 0x26e   : > { %v1019_v9 = vpop.eup %1018 }
 0x26f   : > { %v614_v12 = vadd.f32 1.0, %v1019_v9  ;;  %v615_v13 = vmul.f32 %v613_v8, %v607_v10 }
 0x271   : > { %v616_v14 = vmul.f32 %v614_v12, %v608_v11 }
 0x273   : > { %v619_v15 = vpack.c.bf16 %v616_v14, %v615_v13 }
 0x275   : > { %941 = vmatmul.mubr.bf16.vlgmr.msra.gmra.mrb[0].mxu1 %v619_v15 }
 0x347   : > { %732 = sbr.rel (%p880_p12) target bundleno = 856 (0x358), region = 97 }
 0x348   : > { %v718_v17 = vpop.f32.mrb[0].mxu1 }
 0x349   : > { %v725_v19 = vadd.f32 %v718_v17, %v617_v16  ;;  %v942_v20 = vpop.f32.mrb[1].mxu1 }
 0x34a   : > { %v721_v21 = vpop.f32.mrb[2].mxu1 }
 0x34b   : > { %727 = vst [vmem:[#allocation3] sm:$0xff] %v725_v19  ;;  %v726_v22 = vadd.f32 %v721_v21, %v618_v18  ;;  %v943_v23 = vpop.f32.mrb[3].mxu1 }
 0x34d   : > { %728 = vst [vmem:[#allocation3 + $0x8] sm:$0xff] %v726_v22 }
 0x352   : > { %v733_v24 = vld [vmem:[#allocation3] sm:$0xff] }
 0x353   : > { %v742_v27 = vadd.f32 %v881_v25, %v733_v24 }
 0x354   : > { %v734_v26 = vld [vmem:[#allocation3 + $0x8] sm:$0xff] }
 0x355   : > { %v743_v28 = vadd.f32 %v881_v25, %v734_v26  ;;  %744 = vst [vmem:[#allocation5] sm:$0xff] %v742_v27 }
 0x357   : > { %745 = vst [vmem:[#allocation5 + $0x8] sm:$0xff] %v743_v28 }
 0x358 PF: > { %p1257_p13 = scmp.eq.s32.totalorder %s850_s29, 1  ;;  %s1093_s26 = smov [#allocation5]  }
 0x359   : > { %s755_s12 = sshll.u32 %s1093_s26, 4  ;;  %s756_s12 = int_to_ptr.vmem [resolvable:$true] %s755_s12 }
 0x35a   : > { %s1020_s13 = scalar_lea.vmem %s756_s12, 256  ;;  %p1027_p3 = scmp.lt.s32.totalorder %s756_s12, %s756_s12 }
 0x35b   : > { %p1021_p0 = scmp.ne.s32.totalorder %s756_s12, %s1020_s13  ;;  %p1028_p4 = scmp.lt.s32.totalorder %s1020_s13, %s1020_s13 }
 0x35d   : > { %p1022_p1 = pnand %p1021_p0, %p1257_p13  ;;  %p1029_p5 = por %p1028_p4, %p1027_p3 }
 0x35f   : > { %p1023_p2 = pneg %p1022_p1 }
 0x361   : > { %p1030_p6 = pnand %p1029_p5, %p1023_p2 }
 0x363   : > { %1033 = shalt.err (!%p1030_p6)
}
 0x364   : > { %s1034_s29 = scalar_lea.hbm %s1305_s7, 256 }
 0x365   : > { %p1035_p7 = scmp.ne.s32.totalorder %s1305_s7, %s1034_s29  ;;  %p1040_p10 = scmp.lt.u32.totalorder %s1034_s29, %s1305_s7 }
 0x367   : > { %p1036_p8 = pnand %p1035_p7, %p1257_p13 }
 0x369   : > { %p1037_p9 = pneg %p1036_p8 }
 0x36b   : > { %p1042_p11 = pnand %p1040_p10, %p1037_p9 }
 0x36d   : > { %1045 = shalt.err (!%p1042_p11)
}
 0x36e   : > { %s1094_s19 = smov 128   ;;  %s1095_s20 = smov 8  }
 0x36f   : > { %945 = dma.vmem_to_hbm [thread:$0]  (%p1257_p13), %s756_s12, 256, %s1305_s7, [#allocation6], %s1094_s19, %s1094_s19, %s1095_s20  }
 0x370   : > { %1067 = dma.done.wait (%p1257_p13), [#allocation6], 256  }
 0x371   : > { %1069 = vsyncadd (%p1257_p13), [#allocation6], 4294967040 }
 0x372 PF: > { %s18_s28 = sadd.s32 1, %s1088_s28   ;;  %s1307_s24 = smov %s1076_s25 }
 0x373   : > { %p15_p12 = scmp.ge.s32.totalorder %s18_s28, 4   ;;  %s1308_s25 = smov %s1172_s10 }
 0x374   : > { %s1309_s26 = smov %s1084_s27  ;;  %s1310_s27 = smov %s1312_s30 }
 0x375   :  { %17 = sbr.rel (!%p15_p12) target bundleno = 3 (0x3), region = 139 }
 0x37c   :  { %771 = vsyncpa [#allocation6], 1 }
 0x37d   :  { %773 = vsyncpa [#allocation6 + $0x1], 1 }

</bundles_post_ra>
